<compile_context>
chip_gen: v6e
topology: v6e:2x2x1
jax: 0.10.0
libtpu: 0.0.40
codegen_flags: <defaults>
</compile_context>

<pallas_src>
import jax
import jax.numpy as jnp
from jax.experimental import pallas as pl
from jax.experimental.pallas import tpu as pltpu


_DEFAULT_VMEM_CAPACITY = 64 * 1024 * 1024   # conservative (v7x per-TC VMEM)
_VMEM_HEADROOM_BYTES = 8 * 1024 * 1024      # leave room for compiler scratch


def _vmem_capacity_bytes():
    try:
        cap = int(pltpu.get_tpu_info().vmem_capacity_bytes)
        if cap > 0:
            return cap
    except Exception:
        pass
    return _DEFAULT_VMEM_CAPACITY


def _pick_h_chunk(H):
    """Chunk of the H axis used inside the resident kernel."""
    if H <= 512:
        return H
    for hc in (512, 256, 128):
        if H % hc == 0:
            return hc
    return H


def _make_resident_kernel(H, hc, compute_dtype):
    def kernel(x_ref, omega_ref, out_ref):
        # x_ref:     (tb, D)   batch tile (gamma already folded into omega)
        # omega_ref: (D, H)    full projection matrix, VMEM-resident
        # out_ref:   (tb, 2H)  cos in [:, :H], sin in [:, H:]
        x = x_ref[...]
        if compute_dtype is not None and x.dtype != compute_dtype:
            x = x.astype(compute_dtype)   # in-kernel cast: free VPU filler
        # Static H-chunking: MXU work of chunk j+1 overlaps the cos/sin
        # polynomial (VPU) of chunk j; intermediates bounded to (tb, hc) f32.
        for start in range(0, H, hc):
            end = min(start + hc, H)
            u = jnp.dot(x, omega_ref[:, start:end],
                        preferred_element_type=jnp.float32)
            # TODO(synk): if bundle dumps show the VALU slot saturated (small
            # D), share a single range reduction between cos and sin.
            out_ref[:, start:end] = jnp.cos(u).astype(out_ref.dtype)
            out_ref[:, H + start:H + end] = jnp.sin(u).astype(out_ref.dtype)
    return kernel


def _make_tiled_kernel(compute_dtype):
    def kernel(x_ref, omega_ref, out_ref):
        # out_ref: (tb, 2, tn)  -> out[:, 0, :] = cos, out[:, 1, :] = sin
        x = x_ref[...]
        if compute_dtype is not None and x.dtype != compute_dtype:
            x = x.astype(compute_dtype)
        u = jnp.dot(x, omega_ref[...], preferred_element_type=jnp.float32)
        out_ref[:, 0, :] = jnp.cos(u).astype(out_ref.dtype)
        out_ref[:, 1, :] = jnp.sin(u).astype(out_ref.dtype)
    return kernel


def random_fourier_features(x, omega, gamma=1.0, *, tb=None, tn=512,
                            use_bf16_matmul=False, out_dtype=None,
                            force_tiled=False):
    """phi = cat([cos((gamma*x) @ omega), sin((gamma*x) @ omega)], -1)."""
    B, D = x.shape
    D2, H = omega.shape
    assert D == D2
    out_dtype = x.dtype if out_dtype is None else out_dtype

    # Fold gamma into omega once (one-time elementwise op outside the kernel).
    if gamma != 1.0:
        omega = omega * jnp.asarray(gamma, omega.dtype)

    compute_dtype = jnp.bfloat16 if use_bf16_matmul else None
    if use_bf16_matmul and omega.dtype != jnp.bfloat16:
        # Preferably omega is already stored in bf16 at init (see class below);
        # this one-off cast is only a fallback.
        omega = omega.astype(jnp.bfloat16)

    xb = jnp.dtype(x.dtype).itemsize
    wb = jnp.dtype(omega.dtype).itemsize
    ob = jnp.dtype(out_dtype).itemsize

    cap = _vmem_capacity_bytes()
    budget = int(cap * 0.80)                                   # tile budget
    vmem_limit = int(max(32 * 1024 * 1024, cap - _VMEM_HEADROOM_BYTES))

    hc = _pick_h_chunk(H)

    def resident_bytes(tb_c):
        # x tile double-buffered + omega single-buffered (constant block index)
        # + out tile double-buffered + f32 intermediates (u, cos, sin) per chunk.
        return (2 * tb_c * D * xb
                + D * H * wb
                + 2 * tb_c * 2 * H * ob
                + 3 * tb_c * hc * 4)

    if tb is None:
        # Big tiles amortize the ~0.35us/step overhead and the (tb, 2H) vst
        # stream; keep them smaller on v7x's 64 MiB VMEM.
        tb = 512 if cap >= 96 * 1024 * 1024 else 256

    # ---------------- preferred path: omega resident, grid over batch --------
    tb_r = min(tb, B)
    while resident_bytes(tb_r) > budget and tb_r > 8:
        if tb_r > 256:
            tb_r = max(128, (tb_r // 2) // 128 * 128)   # MXU-aligned shrink
        else:
            tb_r = max(8, (tb_r // 2 + 7) // 8 * 8)

    use_resident = (not force_tiled) and resident_bytes(tb_r) <= budget

    if use_resident:
        # Guarantee >=2 grid steps so both v7x TensorCores get work.
        while pl.cdiv(B, tb_r) < 2 and tb_r >= 256 and tb_r % 256 == 0:
            tb_r //= 2

        kernel = _make_resident_kernel(H, hc, compute_dtype)
        out_shape = jax.ShapeDtypeStruct((B, 2 * H), out_dtype)
        grid = (pl.cdiv(B, tb_r),)
        x_spec = pl.BlockSpec((tb_r, D), lambda i: (i, 0))
        out_spec = pl.BlockSpec((tb_r, 2 * H), lambda i: (i, 0))
        cparams = pltpu.CompilerParams(
            dimension_semantics=("parallel",),
            vmem_limit_bytes=vmem_limit,
        )

        def _call(omega_spec):
            return pl.pallas_call(
                kernel,
                out_shape=out_shape,
                grid_spec=pltpu.PrefetchScalarGridSpec(
                    num_scalar_prefetch=0,
                    grid=grid,
                    in_specs=[x_spec, omega_spec],
                    out_specs=out_spec,
                ),
                compiler_params=cparams,
            )(x, omega)

        try:
            # omega's block index is constant across the grid -> single buffer.
            return _call(pl.BlockSpec((D, H), lambda i: (0, 0),
                                      pipeline_mode=pl.Buffered(1)))
        except Exception:
            # Installed jax rejected single-buffering; default buffering is
            # still correct (just uses one extra omega-sized VMEM buffer).
            return _call(pl.BlockSpec((D, H), lambda i: (0, 0)))

    # ---------------- fallback: omega too big for VMEM, tile the H axis ------
    tb_t = min(tb, B)
    if tb_t < B:
        tb_t = max(8, (tb_t // 8) * 8)
    tn_eff = min(tn, H)
    if tn_eff < H:
        tn_eff = max(128, (tn_eff // 128) * 128)

    kernel = _make_tiled_kernel(compute_dtype)
    out = pl.pallas_call(
        kernel,
        out_shape=jax.ShapeDtypeStruct((B, 2, H), out_dtype),
        grid_spec=pltpu.PrefetchScalarGridSpec(
            num_scalar_prefetch=0,
            grid=(pl.cdiv(B, tb_t), pl.cdiv(H, tn_eff)),
            in_specs=[
                pl.BlockSpec((tb_t, D), lambda i, j: (i, 0)),
                pl.BlockSpec((D, tn_eff), lambda i, j: (0, j)),
            ],
            out_specs=pl.BlockSpec((tb_t, 2, tn_eff), lambda i, j: (i, 0, j)),
        ),
        compiler_params=pltpu.CompilerParams(
            dimension_semantics=("parallel", "parallel"),
            vmem_limit_bytes=vmem_limit,
        ),
    )(x, omega)
    # Row-major reshape of (B, 2, H) == cat([cos, sin], -1): free, no extra
    # HBM round trip for a concat.
    return out.reshape(B, 2 * H)


class FeatBottleneckPallas:
    """JAX/Pallas port of feat_bootleneck.forward. forward() only applies the
    RandomFourierFeatures map; bn / dropout / bottleneck Linear are unused."""

    def __init__(self, feature_dim, gamma=0.5, bottleneck_dim=256, n_dims=4096,
                 key=None, use_bf16_matmul=False, out_dtype=None):
        self.gamma = float(gamma)
        self.feature_dim = feature_dim
        self.n_dims = n_dims
        self.use_bf16_matmul = use_bf16_matmul
        self.out_dtype = out_dtype
        if key is None:
            key = jax.random.PRNGKey(0)
        # new_feature_map(): omega ~ Normal(0, 1), shape (feature_dim, n_dims//2)
        self.omega = jax.random.normal(
            key, (feature_dim, n_dims // 2), dtype=jnp.float32
        )
        # Fold gamma into omega once: (gamma*x) @ omega == x @ (gamma*omega).
        omega_scaled = self.omega * self.gamma
        if use_bf16_matmul:
            # NOTE: bf16 omega adds an absolute phase error ~|u|*2^-8 to the
            # cos/sin arguments; off by default to keep f32-exact numerics.
            omega_scaled = omega_scaled.astype(jnp.bfloat16)
        self.omega_scaled = omega_scaled
        # TODO(synk): bn / dropout / bottleneck Linear exist in the PyTorch
        # __init__ but are never used by forward(); not instantiated here.

    def __call__(self, x):
        return random_fourier_features(
            x, self.omega_scaled, gamma=1.0,
            use_bf16_matmul=self.use_bf16_matmul,
            out_dtype=self.out_dtype,
        )


if __name__ == "__main__":
    key = jax.random.PRNGKey(0)
    k_x, k_w, k_x2 = jax.random.split(key, 3)

    # Small shapes consistent with the module: (batch, feature_dim) -> (batch, n_dims)
    batch, feature_dim, n_dims = 8, 64, 256
    x = jax.random.normal(k_x, (batch, feature_dim), dtype=jnp.float32)

    model = FeatBottleneckPallas(feature_dim, gamma=0.5, n_dims=n_dims, key=k_w)
    phi = jax.block_until_ready(model(x))

    # Reference check in plain JAX (same math as the PyTorch forward).
    u_ref = (x * model.gamma) @ model.omega
    phi_ref = jnp.concatenate([jnp.cos(u_ref), jnp.sin(u_ref)], axis=-1)
    assert phi.shape == (batch, n_dims)
    assert jnp.allclose(phi, phi_ref, atol=1e-5, rtol=1e-5)

    # Multi-step batch grid with a partial last block (exercises masked stores).
    x2 = jax.random.normal(k_x2, (20, feature_dim), dtype=jnp.float32)
    phi2 = jax.block_until_ready(
        random_fourier_features(x2, model.omega_scaled, tb=8))
    u2_ref = (x2 * model.gamma) @ model.omega
    phi2_ref = jnp.concatenate([jnp.cos(u2_ref), jnp.sin(u2_ref)], axis=-1)
    assert phi2.shape == (20, n_dims)
    assert jnp.allclose(phi2, phi2_ref, atol=1e-5, rtol=1e-5)

    # H-tiled fallback path (single (B, 2, H) output + free reshape).
    phi3 = jax.block_until_ready(
        random_fourier_features(x, model.omega_scaled, force_tiled=True))
    assert jnp.allclose(phi3, phi_ref, atol=1e-5, rtol=1e-5)

    print("KERNEL_OK")
</pallas_src>

<mosaic_0001>
module attributes {stable_mosaic.version = 11 : i64} {
  func.func @kernel(%arg0: i32, %arg1: memref<8x64xf32, #tpu.memory_space<vmem>>, %arg2: memref<64x128xf32, #tpu.memory_space<vmem>>, %arg3: memref<8x256xf32, #tpu.memory_space<vmem>>) attributes {dimension_semantics = [#tpu.dimension_semantics<parallel>], iteration_bounds = array<i64: 1>, scalar_prefetch = 0 : i64, scratch_operands = 0 : i64, tpu.core_type = #tpu.core_type<tc>, window_params = [{transform_indices = @transform_0, window_bounds = array<i64: 8, 64>}, {pipeline_mode = #tpu.pipeline_mode<synchronous>, transform_indices = @transform_1, window_bounds = array<i64: 64, 128>}, {transform_indices = @transform_2, window_bounds = array<i64: 8, 256>}]} {
    %c0 = arith.constant 0 : index
    %c0_0 = arith.constant 0 : index
    %0 = vector.load %arg1[%c0, %c0_0] : memref<8x64xf32, #tpu.memory_space<vmem>>, vector<8x64xf32>
    %c0_1 = arith.constant 0 : index
    %c0_2 = arith.constant 0 : index
    %1 = vector.load %arg2[%c0_1, %c0_2] : memref<64x128xf32, #tpu.memory_space<vmem>>, vector<64x128xf32>
    %cst = arith.constant dense<0.000000e+00> : vector<8x128xf32>
    %2 = tpu.matmul %0, %1, %cst {dimension_numbers = #tpu.dot_dimension_numbers<[1], [0], [0], [1], [0, 0, 1, 1], [], []>} : vector<8x64xf32>, vector<64x128xf32>, vector<8x128xf32> -> vector<8x128xf32>
    %3 = math.cos %2 : vector<8x128xf32>
    %c0_3 = arith.constant 0 : index
    %c0_4 = arith.constant 0 : index
    %4 = vector.load %arg3[%c0_3, %c0_4] : memref<8x256xf32, #tpu.memory_space<vmem>>, vector<8x128xf32>
    tpu.vector_store %arg3[%c0_3, %c0_4], %3 {strides = array<i32>} : memref<8x256xf32, #tpu.memory_space<vmem>>, vector<8x128xf32>,
    %5 = math.sin %2 : vector<8x128xf32>
    %c0_5 = arith.constant 0 : index
    %c128 = arith.constant 128 : index
    %6 = vector.load %arg3[%c0_5, %c128] : memref<8x256xf32, #tpu.memory_space<vmem>>, vector<8x128xf32>
    tpu.vector_store %arg3[%c0_5, %c128], %5 {strides = array<i32>} : memref<8x256xf32, #tpu.memory_space<vmem>>, vector<8x128xf32>,
    return
  }
  func.func @transform_0(%arg0: i32) -> (i32, i32) {
    %c0_i32 = arith.constant 0 : i32
    %c0_i32_0 = arith.constant 0 : i32
    return %arg0, %c0_i32 : i32, i32
  }
  func.func @transform_1(%arg0: i32) -> (i32, i32) {
    %c0_i32 = arith.constant 0 : i32
    %c0_i32_0 = arith.constant 0 : i32
    %c0_i32_1 = arith.constant 0 : i32
    return %c0_i32, %c0_i32_0 : i32, i32
  }
  func.func @transform_2(%arg0: i32) -> (i32, i32) {
    %c0_i32 = arith.constant 0 : i32
    %c0_i32_0 = arith.constant 0 : i32
    return %arg0, %c0_i32 : i32, i32
  }
}

module attributes {stable_mosaic.version = 11 : i64} {
  func.func @kernel(%arg0: i32, %arg1: memref<8x64xf32, #tpu.memory_space<vmem>>, %arg2: memref<64x128xf32, #tpu.memory_space<vmem>>, %arg3: memref<8x256xf32, #tpu.memory_space<vmem>>) attributes {dimension_semantics = [#tpu.dimension_semantics<parallel>], iteration_bounds = array<i64: 1>, scalar_prefetch = 0 : i64, scratch_operands = 0 : i64, tpu.core_type = #tpu.core_type<tc>, window_params = [{transform_indices = @transform_0, window_bounds = array<i64: 8, 64>}, {pipeline_mode = #tpu.pipeline_mode<synchronous>, transform_indices = @transform_1, window_bounds = array<i64: 64, 128>}, {transform_indices = @transform_2, window_bounds = array<i64: 8, 256>}]} {
    %c0 = arith.constant 0 : index
    %c0_0 = arith.constant 0 : index
    %0 = vector.load %arg1[%c0, %c0_0] : memref<8x64xf32, #tpu.memory_space<vmem>>, vector<8x64xf32>
    %c0_1 = arith.constant 0 : index
    %c0_2 = arith.constant 0 : index
    %1 = vector.load %arg2[%c0_1, %c0_2] : memref<64x128xf32, #tpu.memory_space<vmem>>, vector<64x128xf32>
    %cst = arith.constant dense<0.000000e+00> : vector<8x128xf32>
    %2 = tpu.matmul %0, %1, %cst {dimension_numbers = #tpu.dot_dimension_numbers<[1], [0], [0], [1], [0, 0, 1, 1], [], []>} : vector<8x64xf32>, vector<64x128xf32>, vector<8x128xf32> -> vector<8x128xf32>
    %3 = math.cos %2 : vector<8x128xf32>
    %c0_3 = arith.constant 0 : index
    %c0_4 = arith.constant 0 : index
    %4 = vector.load %arg3[%c0_3, %c0_4] : memref<8x256xf32, #tpu.memory_space<vmem>>, vector<8x128xf32>
    tpu.vector_store %arg3[%c0_3, %c0_4], %3 {strides = array<i32>} : memref<8x256xf32, #tpu.memory_space<vmem>>, vector<8x128xf32>,
    %5 = math.sin %2 : vector<8x128xf32>
    %c0_5 = arith.constant 0 : index
    %c128 = arith.constant 128 : index
    %6 = vector.load %arg3[%c0_5, %c128] : memref<8x256xf32, #tpu.memory_space<vmem>>, vector<8x128xf32>
    tpu.vector_store %arg3[%c0_5, %c128], %5 {strides = array<i32>} : memref<8x256xf32, #tpu.memory_space<vmem>>, vector<8x128xf32>,
    return
  }
  func.func @transform_0(%arg0: i32) -> (i32, i32) {
    %c0_i32 = arith.constant 0 : i32
    %c0_i32_0 = arith.constant 0 : i32
    return %arg0, %c0_i32 : i32, i32
  }
  func.func @transform_1(%arg0: i32) -> (i32, i32) {
    %c0_i32 = arith.constant 0 : i32
    %c0_i32_0 = arith.constant 0 : i32
    %c0_i32_1 = arith.constant 0 : i32
    return %c0_i32, %c0_i32_0 : i32, i32
  }
  func.func @transform_2(%arg0: i32) -> (i32, i32) {
    %c0_i32 = arith.constant 0 : i32
    %c0_i32_0 = arith.constant 0 : i32
    return %arg0, %c0_i32 : i32, i32
  }
}

</mosaic_0001>

<bundles_post_ra>
// kernel: tpu_custom_call.1
= control target key start
LH: loop header
LB: loop body
LE: loop exit
PB: predicated region body
PF: predicated region fallthrough
CT: control target
= control target key end

     0   :  { %7 = vsyncpa [#allocation3], 0  ;;  %s528_s0 = inlined_call_operand.hbm [shape: f32[8,64], index: 0, kind: input, shape index: {}]   ;;  %s529_s1 = inlined_call_operand.hbm [shape: f32[64,128], index: 1, kind: input, shape index: {}]   ;;  %s530_s2 = inlined_call_operand.hbm [shape: f32[8,256], index: 2, kind: output, shape index: {}]  }
   0x1   :  { %8 = vsyncpa [#allocation6], 0 }
   0x2   :  { %9 = vsyncpa [#allocation4], 0  ;;  %s470_s9 = smov [#allocation2]   ;;  %s471_s11 = smov [#allocation5]  }
   0x3   :  { %s16_s10 = sshll.u32 %s470_s9, 4  ;;  %s25_s12 = sshll.u32 %s471_s11, 4  ;;  %s17_s10 = int_to_ptr.vmem [resolvable:$true] %s16_s10  ;;  %s26_s12 = int_to_ptr.vmem [resolvable:$true] %s25_s12 }
   0x4   :  { %s412_s13 = scalar_lea.vmem %s17_s10, 128  ;;  %p417_p1 = scmp.lt.s32.totalorder %s17_s10, %s17_s10 }
   0x5   :  { %p413_p0 = scmp.ne.s32.totalorder %s17_s10, %s412_s13  ;;  %p418_p2 = scmp.lt.s32.totalorder %s412_s13, %s412_s13 }
   0x7   :  { %p419_p3 = por %p418_p2, %p417_p1 }
   0x9   :  { %p420_p4 = pnand %p419_p3, %p413_p0 }
   0xb   :  { %423 = shalt.err (!%p420_p4)
}
   0xc   :  { %19 = dma.hbm_to_vmem [thread:$0]  %s528_s0, 128, %s17_s10, [#allocation3]  }
   0xd   :  { %s432_s16 = scalar_lea.vmem %s26_s12, 1024  ;;  %p437_p6 = scmp.lt.s32.totalorder %s26_s12, %s26_s12 }
   0xe   :  { %p433_p5 = scmp.ne.s32.totalorder %s26_s12, %s432_s16  ;;  %p438_p7 = scmp.lt.s32.totalorder %s432_s16, %s432_s16 }
  0x10   :  { %p439_p8 = por %p438_p7, %p437_p6 }
  0x12   :  { %p440_p9 = pnand %p439_p8, %p433_p5 }
  0x14   :  { %443 = shalt.err (!%p440_p9)
}
  0x15   :  { %s472_s17 = smov 128   ;;  %s473_s18 = smov 8  }
  0x16   :  { %31 = dma.hbm_to_vmem [thread:$0]  %s529_s1, 1024, %s26_s12, [#allocation6], %s472_s17, %s472_s17, %s473_s18  }
  0x17   :  { %464 = dma.done.wait [#allocation3], 128  }
  0x18   :  { %465 = vsyncadd [#allocation3], 4294967168 }
  0x19   :  { %466 = dma.done.wait [#allocation6], 1024  }
  0x1a   :  { %467 = vsyncadd [#allocation6], 4294966272  ;;  %v474_v0 = vmov 0.0   ;;  %vm475_vm0 = vmmov 0   ;;  %v46_v1 = vld [vmem:[#allocation5 + $0x38] sm:$0xff]  ;;  %v45_v2 = vld [vmem:[#allocation5 + $0x30] sm:$0xff] }
  0x1b   :  { %364 = vmatprep.subr.mxu0 %v474_v0  ;;  %380 = vmatprep.mubr.msk.f32.mxu0 %vm475_vm0, %v474_v0  ;;  %v44_v3 = vld [vmem:[#allocation5 + $0x28] sm:$0xff]  ;;  %v43_v4 = vld [vmem:[#allocation5 + $0x20] sm:$0xff]  ;;  %v42_v5 = vld [vmem:[#allocation5 + $0x18] sm:$0xff]  ;;  %vm47_vm1 = vcmask 523264   ;;  %v476_v22 = vmov 683565275  }
  0x1c   :  { %365 = vmatpush3.msra.mxu0 %v46_v1  ;;  %v41_v6 = vld [vmem:[#allocation5 + $0x10] sm:$0xff]  ;;  %v40_v7 = vld [vmem:[#allocation5 + $0x8] sm:$0xff]  ;;  %v39_v8 = vld [vmem:[#allocation5] sm:$0xff]  ;;  %v477_v24 = vmov 2475754826   ;;  %s482_s0 = smov [#allocation7]  }
  0x1d   :  { %366 = vmatprep.subr.mxu0 %v474_v0  ;;  %v38_v9 = vld [vmem:[#allocation2] sm:$0xff]  ;;  %v478_v27 = vmov 2131351028   ;;  %v479_v30 = vmov 2102212464   ;;  %s336_s1 = sshll.u32 %s482_s0, 4  ;;  %s337_s1 = int_to_ptr.vmem [resolvable:$true] %s336_s1 }
  0x1e   :  { %367 = vmatpush3.msra.mxu0 %v45_v2  ;;  %v480_v33 = vmov 920167782   ;;  %v481_v36 = vmov 1326507024   ;;  %s444_s21 = scalar_lea.vmem %s337_s1, 256  ;;  %p449_p11 = scmp.lt.s32.totalorder %s337_s1, %s337_s1 }
  0x1f   :  { %368 = vmatprep.subr.mxu0 %v474_v0  ;;  %p445_p10 = scmp.ne.s32.totalorder %s337_s1, %s444_s21  ;;  %p450_p12 = scmp.lt.s32.totalorder %s444_s21, %s444_s21 }
  0x20   :  { %369 = vmatpush3.msra.mxu0 %v44_v3 }
  0x21   :  { %370 = vmatprep.subr.mxu0 %v474_v0  ;;  %p451_p13 = por %p450_p12, %p449_p11 }
  0x22   :  { %371 = vmatpush3.msra.mxu0 %v43_v4 }
  0x23   :  { %372 = vmatprep.subr.mxu0 %v474_v0  ;;  %p452_p0 = pnand %p451_p13, %p445_p10 }
  0x24   :  { %373 = vmatpush3.msra.mxu0 %v42_v5 }
  0x25   :  { %374 = vmatprep.subr.mxu0 %v474_v0 }
  0x26   :  { %375 = vmatpush3.msra.mxu0 %v41_v6 }
  0x27   :  { %376 = vmatprep.subr.mxu0 %v474_v0 }
  0x28   :  { %377 = vmatpush3.msra.mxu0 %v40_v7 }
  0x29   :  { %378 = vmatprep.subr.mxu0 %v474_v0 }
  0x2a   :  { %379 = vmatpush3.msra.mxu0 %v39_v8 }
  0x2b   :  { %381 = vmatmul.mubr.msk.f32.vlgmr.msra.gmra.mxu0 %vm47_vm1, %v38_v9 }
  0xeb   :  { %v504_v10 = vpop.f32.mrf.mxu0 }
  0xec   :  { %v124_v11 = vand.u32 2139095040, %v504_v10  ;;  %v121_v16 = vand.u32 2147483647, %v504_v10  ;;  %vm123_vm9 = vcmp.lt.s32.totalorder %v504_v10, 0  ;;  %vm213_vm1 = vweird.f32 %v504_v10 }
  0xed   :  { %v382_v12 = vpop.f32.mrf.mxu0 }
  0xee   :  { %v125_v13 = vshrl.u32 %v124_v11, 23  ;;  %v128_v19 = vand.u32 8388607, %v121_v16  ;;  %vm122_vm10 = vcmp.le.f32.partialorder %v121_v16, 0.7853982 }
  0xf0   :  { %v347_v14 = vadd.s32 4294967169, %v125_v13  ;;  %v129_v38 = vor.u32 8388608, %v128_v19 }
  0xf2   :  { %v131_v15 = vadd.s32 1, %v347_v14  ;;  %v169_v52 = vshll.u32 %v129_v38, 8 }
  0xf4   :  { %vm132_vm2 = vcmp.gt.s32.totalorder %v131_v15, 0 }
  0xf5   :  { %v133_v17 = vsel %vm132_vm2, %v131_v15, 0 }
  0xf6   :  { %v135_v18 = vand.u32 31, %v133_v17  ;;  %v134_v21 = vshrl.u32 %v133_v17, 5 }
  0xf8   :  { %v136_v20 = vsub.s32 32, %v135_v18  ;;  %v138_v23 = vshll.u32 %v476_v22, %v135_v18  ;;  %v141_v25 = vshll.u32 %v477_v24, %v135_v18  ;;  %v144_v29 = vshll.u32 %v478_v27, %v135_v18 }
  0xf9   :  { %v147_v32 = vshll.u32 %v479_v30, %v135_v18  ;;  %v150_v35 = vshll.u32 %v480_v33, %v135_v18  ;;  %vm153_vm3 = vcmp.lt.s32.totalorder %v134_v21, 1  ;;  %vm156_vm4 = vcmp.lt.s32.totalorder %v134_v21, 4 }
  0xfa   :  { %v139_v26 = vshrl.u32 %v477_v24, %v136_v20  ;;  %v142_v28 = vshrl.u32 %v478_v27, %v136_v20  ;;  %v145_v31 = vshrl.u32 %v479_v30, %v136_v20  ;;  %v148_v34 = vshrl.u32 %v480_v33, %v136_v20 }
  0xfb   :  { %v151_v37 = vshrl.u32 %v481_v36, %v136_v20  ;;  %v137_v47 = vshrl.u32 %v476_v22, %v136_v20  ;;  %vm155_vm5 = vcmp.lt.s32.totalorder %v134_v21, 3  ;;  %vm154_vm6 = vcmp.lt.s32.totalorder %v134_v21, 2 }
  0xfc   :  { %v140_v39 = vor.u32 %v139_v26, %v138_v23  ;;  %v143_v40 = vor.u32 %v142_v28, %v141_v25  ;;  %v146_v41 = vor.u32 %v145_v31, %v144_v29  ;;  %v149_v42 = vor.u32 %v148_v34, %v147_v32 }
  0xfd   :  { %v152_v43 = vor.u32 %v151_v37, %v150_v35 }
  0xfe   :  { %v158_v44 = vsel %vm156_vm4, %v146_v41, 2102212464  ;;  %v161_v45 = vsel %vm153_vm3, %v140_v39, %v143_v40  ;;  %v165_v46 = vsel %vm153_vm3, %v143_v40, %v146_v41  ;;  %v162_v48 = vsel %vm156_vm4, %v149_v42, 920167782 }
  0xff   :  { %v166_v49 = vsel %vm156_vm4, %v152_v43, 1326507024  ;;  %v163_v50 = vsel %vm155_vm5, %v146_v41, %v162_v48  ;;  %v157_v53 = vsel %vm153_vm3, %v137_v47, %v140_v39  ;;  %v159_v54 = vsel %vm155_vm5, %v143_v40, %v158_v44 }
 0x100   :  { %v167_v51 = vsel %vm155_vm5, %v149_v42, %v166_v49  ;;  %v164_v55 = vsel %vm154_vm6, %v161_v45, %v163_v50  ;;  %v160_v61 = vsel %vm154_vm6, %v157_v53, %v159_v54 }
 0x101   :  { %v168_v56 = vsel %vm154_vm6, %v165_v46, %v167_v51  ;;  %v513_v59 = vmul.u32.u64.low %v169_v52, %v164_v55  ;;  %v514_v60 = vmul.u32.u64.high %v169_v52, %v164_v55, %v513_v59  ;;  %v176_v63 = vmul.u32 %v169_v52, %v160_v61 }
 0x102   :  { %v510_v57 = vmul.u32.u64.low %v169_v52, %v168_v56  ;;  %v511_v58 = vmul.u32.u64.high %v169_v52, %v168_v56, %v510_v57 }
 0x103   :  { %v179_v62 = vadd.s32 1, %v514_v60 }
 0x104   :  { %vm178_vm7 = vc.u32 %v511_v58, %v513_v59  ;;  %v177_v12 = vadd.s32 %v513_v59, %v511_v58 }
 0x105   :  { %v180_v0 = vsel %vm178_vm7, %v179_v62, %v514_v60 }
 0x106   :  { %v181_v1 = vadd.s32 %v180_v0, %v176_v63 }
 0x108   :  { %v182_v2 = vadd.s32 536870912, %v181_v1 }
 0x10a   :  { %v183_v3 = vshrl.u32 %v182_v2, 30 }
 0x10c   :  { %v184_v4 = vshll.u32 %v183_v3, 30  ;;  %v207_v26 = vsub.s32 4, %v183_v3 }
 0x10e   :  { %v185_v5 = vsub.s32 %v181_v1, %v184_v4  ;;  %v208_v29 = vsel %vm123_vm9, %v207_v26, %v183_v3 }
 0x10f   :  { %v210_v30 = vsel %vm122_vm10, 0, %v208_v29 }
 0x110   :  { %v187_v6 = vsub.s32 0, %v185_v5  ;;  %v318_v31 = vadd.s32 3, %v210_v30  ;;  %v214_v32 = vand.u32 3, %v210_v30 }
 0x112   :  { %v348_v7 = vmin.u32 %v187_v6, %v185_v5  ;;  %v319_v33 = vand.u32 3, %v318_v31  ;;  %vm219_vm11 = vcmp.eq.s32.totalorder %v214_v32, 2  ;;  %vm216_vm13 = vcmp.eq.s32.totalorder %v214_v32, 0 }
 0x113   :  { %vm215_vm15 = vcmp.lt.s32.totalorder %v214_v32, 2 }
 0x114   :  { %v189_v8 = vclz %v348_v7  ;;  %vm324_vm12 = vcmp.eq.s32.totalorder %v319_v33, 2  ;;  %vm321_vm14 = vcmp.eq.s32.totalorder %v319_v33, 0  ;;  %vm320_vm0 = vcmp.lt.s32.totalorder %v319_v33, 2 }
 0x116   :  { %v349_v9 = vadd.s32 4294967294, %v189_v8 }
 0x118   :  { %vm350_vm8 = vcmp.lt.s32.totalorder %v349_v9, 0 }
 0x119   :  { %v192_v11 = vsel %vm350_vm8, 0, %v349_v9 }
 0x11a   :  { %v193_v13 = vsub.s32 32, %v192_v11  ;;  %v197_v14 = vsub.s32 4294967266, %v192_v11  ;;  %v194_v15 = vshll.u32 %v185_v5, %v192_v11 }
 0x11c   :  { %v195_v17 = vshrl.u32 %v177_v12, %v193_v13  ;;  %v198_v18 = vadd.s32 127, %v197_v14 }
 0x11e   :  { %v196_v19 = vor.u32 %v195_v17, %v194_v15  ;;  %v199_v20 = vshll.u32 %v198_v18, 23 }
 0x120   :  { %v200_v21 = vor.u32 4788187, %v199_v20  ;;  %v203_v23 = vcvt.s32.f32 %v196_v19 }
 0x122   :  { %v201_v22 = vand.u32 2147483647, %v200_v21 }
 0x124   :  { %v204_v24 = vmul.f32 %v203_v23, %v201_v22 }
 0x126   :  { %v205_v25 = vxor.u32 2147483648, %v204_v24 }
 0x128   :  { %v206_v27 = vsel %vm123_vm9, %v205_v25, %v204_v24 }
 0x129   :  { %v209_v28 = vsel %vm122_vm10, %v504_v10, %v206_v27 }
 0x12a   :  { %400 = vcosq.f32 %v209_v28 }
 0x12b   :  { %402 = vsinq.f32 %v209_v28 }
 0x137   :  { %v401_v34 = vpop.eup %400 }
 0x138   :  { %v403_v35 = vpop.eup %402  ;;  %v220_v36 = vxor.u32 2147483648, %v401_v34 }
 0x139   :  { %v217_v37 = vxor.u32 2147483648, %v403_v35 }
 0x13a   :  { %v221_v16 = vsel %vm219_vm11, %v220_v36, %v403_v35  ;;  %v326_v38 = vsel %vm324_vm12, %v220_v36, %v403_v35 }
 0x13b   :  { %v218_v39 = vsel %vm216_vm13, %v401_v34, %v217_v37  ;;  %v323_v40 = vsel %vm321_vm14, %v401_v34, %v217_v37 }
 0x13c   :  { %v222_v41 = vsel %vm215_vm15, %v218_v39, %v221_v16  ;;  %v327_v42 = vsel %vm320_vm0, %v323_v40, %v326_v38 }
 0x13d   :  { %v223_v43 = vsel %vm213_vm1, nan, %v222_v41  ;;  %v328_v44 = vsel %vm213_vm1, nan, %v327_v42 }
 0x13e   :  { %224 = vst [vmem:[#allocation7] sm:$0xff] %v223_v43  ;;  %329 = vst [vmem:[#allocation7 + $0x8] sm:$0xff] %v328_v44 }
 0x13f   :  { %455 = shalt.err (!%p452_p0)
}
 0x140   :  { %339 = dma.vmem_to_hbm [thread:$0]  %s337_s1, 256, %s530_s2, [#allocation4]  }
 0x141   :  { %468 = dma.done.wait [#allocation4], 256  }
 0x142   :  { %469 = vsyncadd [#allocation4], 4294967040 }
 0x143   :  { %343 = vsyncpa [#allocation3], 1 }
 0x144   :  { %344 = vsyncpa [#allocation6], 1 }
 0x145   :  { %345 = vsyncpa [#allocation4], 1 }

// kernel: tpu_custom_call.1
= control target key start
LH: loop header
LB: loop body
LE: loop exit
PB: predicated region body
PF: predicated region fallthrough
CT: control target
= control target key end

     0   :  { %7 = vsyncpa [#allocation3], 0  ;;  %s528_s0 = inlined_call_operand.hbm [shape: f32[8,64], index: 0, kind: input, shape index: {}]   ;;  %s529_s1 = inlined_call_operand.hbm [shape: f32[64,128], index: 1, kind: input, shape index: {}]   ;;  %s530_s2 = inlined_call_operand.hbm [shape: f32[8,256], index: 2, kind: output, shape index: {}]  }
   0x1   :  { %8 = vsyncpa [#allocation6], 0 }
   0x2   :  { %9 = vsyncpa [#allocation4], 0  ;;  %s470_s9 = smov [#allocation2]   ;;  %s471_s11 = smov [#allocation5]  }
   0x3   :  { %s16_s10 = sshll.u32 %s470_s9, 4  ;;  %s25_s12 = sshll.u32 %s471_s11, 4  ;;  %s17_s10 = int_to_ptr.vmem [resolvable:$true] %s16_s10  ;;  %s26_s12 = int_to_ptr.vmem [resolvable:$true] %s25_s12 }
   0x4   :  { %s412_s13 = scalar_lea.vmem %s17_s10, 128  ;;  %p417_p1 = scmp.lt.s32.totalorder %s17_s10, %s17_s10 }
   0x5   :  { %p413_p0 = scmp.ne.s32.totalorder %s17_s10, %s412_s13  ;;  %p418_p2 = scmp.lt.s32.totalorder %s412_s13, %s412_s13 }
   0x7   :  { %p419_p3 = por %p418_p2, %p417_p1 }
   0x9   :  { %p420_p4 = pnand %p419_p3, %p413_p0 }
   0xb   :  { %423 = shalt.err (!%p420_p4)
}
   0xc   :  { %19 = dma.hbm_to_vmem [thread:$0]  %s528_s0, 128, %s17_s10, [#allocation3]  }
   0xd   :  { %s432_s16 = scalar_lea.vmem %s26_s12, 1024  ;;  %p437_p6 = scmp.lt.s32.totalorder %s26_s12, %s26_s12 }
   0xe   :  { %p433_p5 = scmp.ne.s32.totalorder %s26_s12, %s432_s16  ;;  %p438_p7 = scmp.lt.s32.totalorder %s432_s16, %s432_s16 }
  0x10   :  { %p439_p8 = por %p438_p7, %p437_p6 }
  0x12   :  { %p440_p9 = pnand %p439_p8, %p433_p5 }
  0x14   :  { %443 = shalt.err (!%p440_p9)
}
  0x15   :  { %s472_s17 = smov 128   ;;  %s473_s18 = smov 8  }
  0x16   :  { %31 = dma.hbm_to_vmem [thread:$0]  %s529_s1, 1024, %s26_s12, [#allocation6], %s472_s17, %s472_s17, %s473_s18  }
  0x17   :  { %464 = dma.done.wait [#allocation3], 128  }
  0x18   :  { %465 = vsyncadd [#allocation3], 4294967168 }
  0x19   :  { %466 = dma.done.wait [#allocation6], 1024  }
  0x1a   :  { %467 = vsyncadd [#allocation6], 4294966272  ;;  %v474_v0 = vmov 0.0   ;;  %vm475_vm0 = vmmov 0   ;;  %v46_v1 = vld [vmem:[#allocation5 + $0x38] sm:$0xff]  ;;  %v45_v2 = vld [vmem:[#allocation5 + $0x30] sm:$0xff] }
  0x1b   :  { %364 = vmatprep.subr.mxu0 %v474_v0  ;;  %380 = vmatprep.mubr.msk.f32.mxu0 %vm475_vm0, %v474_v0  ;;  %v44_v3 = vld [vmem:[#allocation5 + $0x28] sm:$0xff]  ;;  %v43_v4 = vld [vmem:[#allocation5 + $0x20] sm:$0xff]  ;;  %v42_v5 = vld [vmem:[#allocation5 + $0x18] sm:$0xff]  ;;  %vm47_vm1 = vcmask 523264   ;;  %v476_v22 = vmov 683565275  }
  0x1c   :  { %365 = vmatpush3.msra.mxu0 %v46_v1  ;;  %v41_v6 = vld [vmem:[#allocation5 + $0x10] sm:$0xff]  ;;  %v40_v7 = vld [vmem:[#allocation5 + $0x8] sm:$0xff]  ;;  %v39_v8 = vld [vmem:[#allocation5] sm:$0xff]  ;;  %v477_v24 = vmov 2475754826   ;;  %s482_s0 = smov [#allocation7]  }
  0x1d   :  { %366 = vmatprep.subr.mxu0 %v474_v0  ;;  %v38_v9 = vld [vmem:[#allocation2] sm:$0xff]  ;;  %v478_v27 = vmov 2131351028   ;;  %v479_v30 = vmov 2102212464   ;;  %s336_s1 = sshll.u32 %s482_s0, 4  ;;  %s337_s1 = int_to_ptr.vmem [resolvable:$true] %s336_s1 }
  0x1e   :  { %367 = vmatpush3.msra.mxu0 %v45_v2  ;;  %v480_v33 = vmov 920167782   ;;  %v481_v36 = vmov 1326507024   ;;  %s444_s21 = scalar_lea.vmem %s337_s1, 256  ;;  %p449_p11 = scmp.lt.s32.totalorder %s337_s1, %s337_s1 }
  0x1f   :  { %368 = vmatprep.subr.mxu0 %v474_v0  ;;  %p445_p10 = scmp.ne.s32.totalorder %s337_s1, %s444_s21  ;;  %p450_p12 = scmp.lt.s32.totalorder %s444_s21, %s444_s21 }
  0x20   :  { %369 = vmatpush3.msra.mxu0 %v44_v3 }
  0x21   :  { %370 = vmatprep.subr.mxu0 %v474_v0  ;;  %p451_p13 = por %p450_p12, %p449_p11 }
  0x22   :  { %371 = vmatpush3.msra.mxu0 %v43_v4 }
  0x23   :  { %372 = vmatprep.subr.mxu0 %v474_v0  ;;  %p452_p0 = pnand %p451_p13, %p445_p10 }
  0x24   :  { %373 = vmatpush3.msra.mxu0 %v42_v5 }
  0x25   :  { %374 = vmatprep.subr.mxu0 %v474_v0 }
  0x26   :  { %375 = vmatpush3.msra.mxu0 %v41_v6 }
  0x27   :  { %376 = vmatprep.subr.mxu0 %v474_v0 }
  0x28   :  { %377 = vmatpush3.msra.mxu0 %v40_v7 }
  0x29   :  { %378 = vmatprep.subr.mxu0 %v474_v0 }
  0x2a   :  { %379 = vmatpush3.msra.mxu0 %v39_v8 }
  0x2b   :  { %381 = vmatmul.mubr.msk.f32.vlgmr.msra.gmra.mxu0 %vm47_vm1, %v38_v9 }
  0xeb   :  { %v504_v10 = vpop.f32.mrf.mxu0 }
  0xec   :  { %v124_v11 = vand.u32 2139095040, %v504_v10  ;;  %v121_v16 = vand.u32 2147483647, %v504_v10  ;;  %vm123_vm9 = vcmp.lt.s32.totalorder %v504_v10, 0  ;;  %vm213_vm1 = vweird.f32 %v504_v10 }
  0xed   :  { %v382_v12 = vpop.f32.mrf.mxu0 }
  0xee   :  { %v125_v13 = vshrl.u32 %v124_v11, 23  ;;  %v128_v19 = vand.u32 8388607, %v121_v16  ;;  %vm122_vm10 = vcmp.le.f32.partialorder %v121_v16, 0.7853982 }
  0xf0   :  { %v347_v14 = vadd.s32 4294967169, %v125_v13  ;;  %v129_v38 = vor.u32 8388608, %v128_v19 }
  0xf2   :  { %v131_v15 = vadd.s32 1, %v347_v14  ;;  %v169_v52 = vshll.u32 %v129_v38, 8 }
  0xf4   :  { %vm132_vm2 = vcmp.gt.s32.totalorder %v131_v15, 0 }
  0xf5   :  { %v133_v17 = vsel %vm132_vm2, %v131_v15, 0 }
  0xf6   :  { %v135_v18 = vand.u32 31, %v133_v17  ;;  %v134_v21 = vshrl.u32 %v133_v17, 5 }
  0xf8   :  { %v136_v20 = vsub.s32 32, %v135_v18  ;;  %v138_v23 = vshll.u32 %v476_v22, %v135_v18  ;;  %v141_v25 = vshll.u32 %v477_v24, %v135_v18  ;;  %v144_v29 = vshll.u32 %v478_v27, %v135_v18 }
  0xf9   :  { %v147_v32 = vshll.u32 %v479_v30, %v135_v18  ;;  %v150_v35 = vshll.u32 %v480_v33, %v135_v18  ;;  %vm153_vm3 = vcmp.lt.s32.totalorder %v134_v21, 1  ;;  %vm156_vm4 = vcmp.lt.s32.totalorder %v134_v21, 4 }
  0xfa   :  { %v139_v26 = vshrl.u32 %v477_v24, %v136_v20  ;;  %v142_v28 = vshrl.u32 %v478_v27, %v136_v20  ;;  %v145_v31 = vshrl.u32 %v479_v30, %v136_v20  ;;  %v148_v34 = vshrl.u32 %v480_v33, %v136_v20 }
  0xfb   :  { %v151_v37 = vshrl.u32 %v481_v36, %v136_v20  ;;  %v137_v47 = vshrl.u32 %v476_v22, %v136_v20  ;;  %vm155_vm5 = vcmp.lt.s32.totalorder %v134_v21, 3  ;;  %vm154_vm6 = vcmp.lt.s32.totalorder %v134_v21, 2 }
  0xfc   :  { %v140_v39 = vor.u32 %v139_v26, %v138_v23  ;;  %v143_v40 = vor.u32 %v142_v28, %v141_v25  ;;  %v146_v41 = vor.u32 %v145_v31, %v144_v29  ;;  %v149_v42 = vor.u32 %v148_v34, %v147_v32 }
  0xfd   :  { %v152_v43 = vor.u32 %v151_v37, %v150_v35 }
  0xfe   :  { %v158_v44 = vsel %vm156_vm4, %v146_v41, 2102212464  ;;  %v161_v45 = vsel %vm153_vm3, %v140_v39, %v143_v40  ;;  %v165_v46 = vsel %vm153_vm3, %v143_v40, %v146_v41  ;;  %v162_v48 = vsel %vm156_vm4, %v149_v42, 920167782 }
  0xff   :  { %v166_v49 = vsel %vm156_vm4, %v152_v43, 1326507024  ;;  %v163_v50 = vsel %vm155_vm5, %v146_v41, %v162_v48  ;;  %v157_v53 = vsel %vm153_vm3, %v137_v47, %v140_v39  ;;  %v159_v54 = vsel %vm155_vm5, %v143_v40, %v158_v44 }
 0x100   :  { %v167_v51 = vsel %vm155_vm5, %v149_v42, %v166_v49  ;;  %v164_v55 = vsel %vm154_vm6, %v161_v45, %v163_v50  ;;  %v160_v61 = vsel %vm154_vm6, %v157_v53, %v159_v54 }
 0x101   :  { %v168_v56 = vsel %vm154_vm6, %v165_v46, %v167_v51  ;;  %v513_v59 = vmul.u32.u64.low %v169_v52, %v164_v55  ;;  %v514_v60 = vmul.u32.u64.high %v169_v52, %v164_v55, %v513_v59  ;;  %v176_v63 = vmul.u32 %v169_v52, %v160_v61 }
 0x102   :  { %v510_v57 = vmul.u32.u64.low %v169_v52, %v168_v56  ;;  %v511_v58 = vmul.u32.u64.high %v169_v52, %v168_v56, %v510_v57 }
 0x103   :  { %v179_v62 = vadd.s32 1, %v514_v60 }
 0x104   :  { %vm178_vm7 = vc.u32 %v511_v58, %v513_v59  ;;  %v177_v12 = vadd.s32 %v513_v59, %v511_v58 }
 0x105   :  { %v180_v0 = vsel %vm178_vm7, %v179_v62, %v514_v60 }
 0x106   :  { %v181_v1 = vadd.s32 %v180_v0, %v176_v63 }
 0x108   :  { %v182_v2 = vadd.s32 536870912, %v181_v1 }
 0x10a   :  { %v183_v3 = vshrl.u32 %v182_v2, 30 }
 0x10c   :  { %v184_v4 = vshll.u32 %v183_v3, 30  ;;  %v207_v26 = vsub.s32 4, %v183_v3 }
 0x10e   :  { %v185_v5 = vsub.s32 %v181_v1, %v184_v4  ;;  %v208_v29 = vsel %vm123_vm9, %v207_v26, %v183_v3 }
 0x10f   :  { %v210_v30 = vsel %vm122_vm10, 0, %v208_v29 }
 0x110   :  { %v187_v6 = vsub.s32 0, %v185_v5  ;;  %v318_v31 = vadd.s32 3, %v210_v30  ;;  %v214_v32 = vand.u32 3, %v210_v30 }
 0x112   :  { %v348_v7 = vmin.u32 %v187_v6, %v185_v5  ;;  %v319_v33 = vand.u32 3, %v318_v31  ;;  %vm219_vm11 = vcmp.eq.s32.totalorder %v214_v32, 2  ;;  %vm216_vm13 = vcmp.eq.s32.totalorder %v214_v32, 0 }
 0x113   :  { %vm215_vm15 = vcmp.lt.s32.totalorder %v214_v32, 2 }
 0x114   :  { %v189_v8 = vclz %v348_v7  ;;  %vm324_vm12 = vcmp.eq.s32.totalorder %v319_v33, 2  ;;  %vm321_vm14 = vcmp.eq.s32.totalorder %v319_v33, 0  ;;  %vm320_vm0 = vcmp.lt.s32.totalorder %v319_v33, 2 }
 0x116   :  { %v349_v9 = vadd.s32 4294967294, %v189_v8 }
 0x118   :  { %vm350_vm8 = vcmp.lt.s32.totalorder %v349_v9, 0 }
 0x119   :  { %v192_v11 = vsel %vm350_vm8, 0, %v349_v9 }
 0x11a   :  { %v193_v13 = vsub.s32 32, %v192_v11  ;;  %v197_v14 = vsub.s32 4294967266, %v192_v11  ;;  %v194_v15 = vshll.u32 %v185_v5, %v192_v11 }
 0x11c   :  { %v195_v17 = vshrl.u32 %v177_v12, %v193_v13  ;;  %v198_v18 = vadd.s32 127, %v197_v14 }
 0x11e   :  { %v196_v19 = vor.u32 %v195_v17, %v194_v15  ;;  %v199_v20 = vshll.u32 %v198_v18, 23 }
 0x120   :  { %v200_v21 = vor.u32 4788187, %v199_v20  ;;  %v203_v23 = vcvt.s32.f32 %v196_v19 }
 0x122   :  { %v201_v22 = vand.u32 2147483647, %v200_v21 }
 0x124   :  { %v204_v24 = vmul.f32 %v203_v23, %v201_v22 }
 0x126   :  { %v205_v25 = vxor.u32 2147483648, %v204_v24 }
 0x128   :  { %v206_v27 = vsel %vm123_vm9, %v205_v25, %v204_v24 }
 0x129   :  { %v209_v28 = vsel %vm122_vm10, %v504_v10, %v206_v27 }
 0x12a   :  { %400 = vcosq.f32 %v209_v28 }
 0x12b   :  { %402 = vsinq.f32 %v209_v28 }
 0x137   :  { %v401_v34 = vpop.eup %400 }
 0x138   :  { %v403_v35 = vpop.eup %402  ;;  %v220_v36 = vxor.u32 2147483648, %v401_v34 }
 0x139   :  { %v217_v37 = vxor.u32 2147483648, %v403_v35 }
 0x13a   :  { %v221_v16 = vsel %vm219_vm11, %v220_v36, %v403_v35  ;;  %v326_v38 = vsel %vm324_vm12, %v220_v36, %v403_v35 }
 0x13b   :  { %v218_v39 = vsel %vm216_vm13, %v401_v34, %v217_v37  ;;  %v323_v40 = vsel %vm321_vm14, %v401_v34, %v217_v37 }
 0x13c   :  { %v222_v41 = vsel %vm215_vm15, %v218_v39, %v221_v16  ;;  %v327_v42 = vsel %vm320_vm0, %v323_v40, %v326_v38 }
 0x13d   :  { %v223_v43 = vsel %vm213_vm1, nan, %v222_v41  ;;  %v328_v44 = vsel %vm213_vm1, nan, %v327_v42 }
 0x13e   :  { %224 = vst [vmem:[#allocation7] sm:$0xff] %v223_v43  ;;  %329 = vst [vmem:[#allocation7 + $0x8] sm:$0xff] %v328_v44 }
 0x13f   :  { %455 = shalt.err (!%p452_p0)
}
 0x140   :  { %339 = dma.vmem_to_hbm [thread:$0]  %s337_s1, 256, %s530_s2, [#allocation4]  }
 0x141   :  { %468 = dma.done.wait [#allocation4], 256  }
 0x142   :  { %469 = vsyncadd [#allocation4], 4294967040 }
 0x143   :  { %343 = vsyncpa [#allocation3], 1 }
 0x144   :  { %344 = vsyncpa [#allocation6], 1 }
 0x145   :  { %345 = vsyncpa [#allocation4], 1 }

</bundles_post_ra>
